<compile_context>
chip_gen: v5e
topology: v5e:2x2
jax: 0.10.0
libtpu: 0.0.40
codegen_flags: <defaults>
</compile_context>

<pallas_src>
import math
import functools

import jax
import jax.numpy as jnp
from jax.experimental import pallas as pl
from jax.experimental.pallas import tpu as pltpu


# ----------------------------------------------------------------------------
# Kernel 1: fused embedding MLP + positional encoding (per batch element)
#   h = (relu(x @ W1 + b1) @ W2 + b2) + PE
# ----------------------------------------------------------------------------
def _embed_pe_kernel(x_ref, w1_ref, b1_ref, w2_ref, b2_ref, pe_ref, o_ref):
    x = x_ref[0].astype(jnp.float32)                                # (S, d_model)
    h = jnp.dot(x, w1_ref[...], preferred_element_type=jnp.float32) + b1_ref[...]
    h = jnp.maximum(h, 0.0)
    h = jnp.dot(h, w2_ref[...], preferred_element_type=jnp.float32) + b2_ref[...]
    h = h + pe_ref[...]
    o_ref[0] = h.astype(o_ref.dtype)


def embed_and_pos_encode(x, w1, b1, w2, b2, pe):
    """x: (B, S, d_model) -> (B, S, H)."""
    B, S, Dm = x.shape
    H = w2.shape[1]
    wmap = lambda b: (0, 0)
    return pl.pallas_call(
        _embed_pe_kernel,
        out_shape=jax.ShapeDtypeStruct((B, S, H), x.dtype),
        grid=(B,),
        in_specs=[
            pl.BlockSpec((1, S, Dm), lambda b: (b, 0, 0)),
            pl.BlockSpec((Dm, H), wmap),
            pl.BlockSpec((1, H), wmap),
            pl.BlockSpec((H, H), wmap),
            pl.BlockSpec((1, H), wmap),
            pl.BlockSpec((S, H), wmap),
        ],
        out_specs=pl.BlockSpec((1, S, H), lambda b: (b, 0, 0)),
        compiler_params=pltpu.CompilerParams(dimension_semantics=("parallel",)),
    )(x, w1, b1.reshape(1, H), w2, b2.reshape(1, H), pe)


# ----------------------------------------------------------------------------
# Kernel 2: fully fused TransformerEncoderLayer (post-norm, ReLU FF)
# ----------------------------------------------------------------------------
def _encoder_layer_kernel(h_ref, wqkv_ref, bqkv_ref, wo_ref, bo_ref,
                          ln1_g_ref, ln1_b_ref,
                          ffw1_ref, ffb1_ref, ffw2_ref, ffb2_ref,
                          ln2_g_ref, ln2_b_ref,
                          o_ref, *, nhead, head_dim, eps):
    hf = h_ref[0].astype(jnp.float32)                               # (S, H)
    H = nhead * head_dim
    scale = 1.0 / math.sqrt(head_dim)

    # --- fused QKV projection: one MXU pass, lane-dense (S, 3H) result ------
    qkv = jnp.dot(hf, wqkv_ref[...], preferred_element_type=jnp.float32)
    qkv = qkv + bqkv_ref[...]
    q = qkv[:, 0 * H:1 * H]
    k = qkv[:, 1 * H:2 * H]
    v = qkv[:, 2 * H:3 * H]

    # --- multi-head self-attention via static per-head lane slices ---------
    # (no HBM-materialized transposes; everything stays in VMEM/vregs)
    heads = []
    for hdx in range(nhead):
        lo = hdx * head_dim
        q_h = q[:, lo:lo + head_dim]                                # (S, Dh)
        k_h = k[:, lo:lo + head_dim]
        v_h = v[:, lo:lo + head_dim]
        s = jax.lax.dot_general(q_h, k_h, (((1,), (1,)), ((), ())),
                                preferred_element_type=jnp.float32) * scale
        s = s - jnp.max(s, axis=-1, keepdims=True)
        p = jnp.exp(s)
        p = p * pl.reciprocal(jnp.sum(p, axis=-1, keepdims=True), approx=True)
        heads.append(jnp.dot(p, v_h, preferred_element_type=jnp.float32))
    attn = jnp.concatenate(heads, axis=-1)                          # (S, H)

    # --- out-projection + residual + LayerNorm1 -----------------------------
    attn = jnp.dot(attn, wo_ref[...], preferred_element_type=jnp.float32)
    attn = attn + bo_ref[...]
    x1 = hf + attn
    mu1 = jnp.mean(x1, axis=-1, keepdims=True)
    xc1 = x1 - mu1
    var1 = jnp.mean(xc1 * xc1, axis=-1, keepdims=True)
    h1 = xc1 * jax.lax.rsqrt(var1 + eps) * ln1_g_ref[...] + ln1_b_ref[...]

    # --- feed-forward (intermediate kept in VMEM) ---------------------------
    f = jnp.dot(h1, ffw1_ref[...], preferred_element_type=jnp.float32)
    f = jnp.maximum(f + ffb1_ref[...], 0.0)
    f = jnp.dot(f, ffw2_ref[...], preferred_element_type=jnp.float32)
    f = f + ffb2_ref[...]

    # --- residual + LayerNorm2 ----------------------------------------------
    x2 = h1 + f
    mu2 = jnp.mean(x2, axis=-1, keepdims=True)
    xc2 = x2 - mu2
    var2 = jnp.mean(xc2 * xc2, axis=-1, keepdims=True)
    out = xc2 * jax.lax.rsqrt(var2 + eps) * ln2_g_ref[...] + ln2_b_ref[...]

    o_ref[0] = out.astype(o_ref.dtype)


def encoder_layer(h, lp, *, nhead, eps=1e-5):
    """h: (B, S, H) -> (B, S, H). One fused pallas_call for the whole layer."""
    B, S, H = h.shape
    head_dim = H // nhead
    d_hid = lp["ff_w1"].shape[1]

    # Fused QKV weights (single matmul inside the kernel).
    wqkv = jnp.concatenate([lp["wq"], lp["wk"], lp["wv"]], axis=1)   # (H, 3H)
    bqkv = jnp.concatenate([lp["bq"], lp["bk"], lp["bv"]]).reshape(1, 3 * H)

    wmap = lambda b: (0, 0)
    return pl.pallas_call(
        functools.partial(_encoder_layer_kernel, nhead=nhead,
                          head_dim=head_dim, eps=eps),
        out_shape=jax.ShapeDtypeStruct((B, S, H), h.dtype),
        grid=(B,),
        in_specs=[
            pl.BlockSpec((1, S, H), lambda b: (b, 0, 0)),   # activations
            pl.BlockSpec((H, 3 * H), wmap),                 # wqkv (resident)
            pl.BlockSpec((1, 3 * H), wmap),                 # bqkv
            pl.BlockSpec((H, H), wmap),                     # wo
            pl.BlockSpec((1, H), wmap),                     # bo
            pl.BlockSpec((1, H), wmap),                     # ln1 gamma
            pl.BlockSpec((1, H), wmap),                     # ln1 beta
            pl.BlockSpec((H, d_hid), wmap),                 # ff_w1
            pl.BlockSpec((1, d_hid), wmap),                 # ff_b1
            pl.BlockSpec((d_hid, H), wmap),                 # ff_w2
            pl.BlockSpec((1, H), wmap),                     # ff_b2
            pl.BlockSpec((1, H), wmap),                     # ln2 gamma
            pl.BlockSpec((1, H), wmap),                     # ln2 beta
        ],
        out_specs=pl.BlockSpec((1, S, H), lambda b: (b, 0, 0)),
        compiler_params=pltpu.CompilerParams(dimension_semantics=("parallel",)),
    )(h, wqkv, bqkv, lp["wo"], lp["bo"].reshape(1, H),
      lp["ln1_g"].reshape(1, H), lp["ln1_b"].reshape(1, H),
      lp["ff_w1"], lp["ff_b1"].reshape(1, d_hid),
      lp["ff_w2"], lp["ff_b2"].reshape(1, H),
      lp["ln2_g"].reshape(1, H), lp["ln2_b"].reshape(1, H))


# ----------------------------------------------------------------------------
# Kernel 3: fused fc_out + softmax
# ----------------------------------------------------------------------------
def _fc_softmax_kernel(h_ref, w_ref, b_ref, o_ref):
    hf = h_ref[0].astype(jnp.float32)                               # (S, H)
    y = jnp.dot(hf, w_ref[...], preferred_element_type=jnp.float32) + b_ref[...]
    y = y - jnp.max(y, axis=-1, keepdims=True)
    e = jnp.exp(y)
    # exact reciprocal so output probabilities sum to 1 at full precision
    p = e * pl.reciprocal(jnp.sum(e, axis=-1, keepdims=True), approx=False)
    o_ref[0] = p.astype(o_ref.dtype)


def fc_out_softmax(h, w, b):
    """h: (B, S, H), w: (H, A) -> probs (B, S, A)."""
    B, S, H = h.shape
    A = w.shape[1]
    wmap = lambda bi: (0, 0)
    return pl.pallas_call(
        _fc_softmax_kernel,
        out_shape=jax.ShapeDtypeStruct((B, S, A), h.dtype),
        grid=(B,),
        in_specs=[
            pl.BlockSpec((1, S, H), lambda bi: (bi, 0, 0)),
            pl.BlockSpec((H, A), wmap),
            pl.BlockSpec((1, A), wmap),
        ],
        out_specs=pl.BlockSpec((1, S, A), lambda bi: (bi, 0, 0)),
        compiler_params=pltpu.CompilerParams(dimension_semantics=("parallel",)),
    )(h, w, b.reshape(1, A))


# ----------------------------------------------------------------------------
# Parameter construction & forward pass
# ----------------------------------------------------------------------------
def sinusoidal_pe(seq_len, d_model, dtype=jnp.float32):
    position = jnp.arange(seq_len, dtype=jnp.float32)[:, None]
    div_term = jnp.exp(jnp.arange(0, d_model, 2, dtype=jnp.float32)
                       * (-math.log(10000.0) / d_model))
    pe = jnp.zeros((seq_len, d_model), dtype=jnp.float32)
    pe = pe.at[:, 0::2].set(jnp.sin(position * div_term))
    pe = pe.at[:, 1::2].set(jnp.cos(position * div_term))
    # PE added along the sequence axis of the batch-first input; dropout = id.
    return pe.astype(dtype)                                         # (S, H)


def init_params(key, d_model, nhead, d_hid, nlayers, num_actions, hidden):
    def dense(k, din, dout):
        kw, kb = jax.random.split(k)
        bound = 1.0 / math.sqrt(din)
        w = jax.random.uniform(kw, (din, dout), jnp.float32, -bound, bound)
        b = jax.random.uniform(kb, (dout,), jnp.float32, -bound, bound)
        return w, b

    keys = jax.random.split(key, 4 + nlayers)
    p = {}
    p["emb_w1"], p["emb_b1"] = dense(keys[0], d_model, hidden)
    p["emb_w2"], p["emb_b2"] = dense(keys[1], hidden, hidden)
    p["fc_w"], p["fc_b"] = dense(keys[2], hidden, num_actions)

    p["layers"] = []
    for l in range(nlayers):
        lk = jax.random.split(keys[4 + l], 6)
        lp = {}
        lp["wq"], lp["bq"] = dense(lk[0], hidden, hidden)
        lp["wk"], lp["bk"] = dense(lk[1], hidden, hidden)
        lp["wv"], lp["bv"] = dense(lk[2], hidden, hidden)
        lp["wo"], lp["bo"] = dense(lk[3], hidden, hidden)
        lp["ff_w1"], lp["ff_b1"] = dense(lk[4], hidden, d_hid)
        lp["ff_w2"], lp["ff_b2"] = dense(lk[5], d_hid, hidden)
        lp["ln1_g"] = jnp.ones((hidden,), jnp.float32)
        lp["ln1_b"] = jnp.zeros((hidden,), jnp.float32)
        lp["ln2_g"] = jnp.ones((hidden,), jnp.float32)
        lp["ln2_b"] = jnp.zeros((hidden,), jnp.float32)
        p["layers"].append(lp)
    return p


def transformer_policy_forward(params, x, *, nhead):
    """x: (B, S, d_model) -> action_probs (B, S, num_actions)."""
    B, S, _ = x.shape
    H = params["emb_w2"].shape[1]

    pe = sinusoidal_pe(S, H, x.dtype)
    h = embed_and_pos_encode(x, params["emb_w1"], params["emb_b1"],
                             params["emb_w2"], params["emb_b2"], pe)

    for lp in params["layers"]:
        h = encoder_layer(h, lp, nhead=nhead)

    return fc_out_softmax(h, params["fc_w"], params["fc_b"])


# ----------------------------------------------------------------------------
# Main
# ----------------------------------------------------------------------------
if __name__ == "__main__":
    # Small, forward-consistent shapes.
    d_model = 4
    nhead = 4
    d_hid = 64
    nlayers = 2
    num_actions = 6
    hidden_size = 32
    batch = 2
    seq = 8

    params = init_params(jax.random.PRNGKey(42), d_model, nhead, d_hid,
                         nlayers, num_actions, hidden_size)

    x = jax.random.normal(jax.random.PRNGKey(0), (batch, seq, d_model),
                          dtype=jnp.float32)

    fwd = jax.jit(functools.partial(transformer_policy_forward, nhead=nhead))
    action_probs = fwd(params, x)
    jax.block_until_ready(action_probs)

    assert action_probs.shape == (batch, seq, num_actions)
    assert bool(jnp.all(jnp.isfinite(action_probs)))
    # softmax rows should sum to ~1
    assert bool(jnp.allclose(action_probs.sum(-1), 1.0, atol=1e-5))

    print("KERNEL_OK")
</pallas_src>

<mosaic_0001>
module attributes {stable_mosaic.version = 11 : i64} {
  func.func @_embed_pe_kernel(%arg0: i32, %arg1: memref<1x8x4xf32, #tpu.memory_space<vmem>>, %arg2: memref<4x32xf32, #tpu.memory_space<vmem>>, %arg3: memref<1x32xf32, #tpu.memory_space<vmem>>, %arg4: memref<32x32xf32, #tpu.memory_space<vmem>>, %arg5: memref<1x32xf32, #tpu.memory_space<vmem>>, %arg6: memref<8x32xf32, #tpu.memory_space<vmem>>, %arg7: memref<1x8x32xf32, #tpu.memory_space<vmem>>) attributes {dimension_semantics = [#tpu.dimension_semantics<parallel>], iteration_bounds = array<i64: 2>, scalar_prefetch = 0 : i64, scratch_operands = 0 : i64, tpu.core_type = #tpu.core_type<tc>, window_params = [{transform_indices = @transform_0, window_bounds = array<i64: 1, 8, 4>}, {pipeline_mode = #tpu.pipeline_mode<synchronous>, transform_indices = @transform_1, window_bounds = array<i64: 4, 32>}, {pipeline_mode = #tpu.pipeline_mode<synchronous>, transform_indices = @transform_2, window_bounds = array<i64: 1, 32>}, {pipeline_mode = #tpu.pipeline_mode<synchronous>, transform_indices = @transform_3, window_bounds = array<i64: 32, 32>}, {pipeline_mode = #tpu.pipeline_mode<synchronous>, transform_indices = @transform_4, window_bounds = array<i64: 1, 32>}, {pipeline_mode = #tpu.pipeline_mode<synchronous>, transform_indices = @transform_5, window_bounds = array<i64: 8, 32>}, {transform_indices = @transform_6, window_bounds = array<i64: 1, 8, 32>}]} {
    %c0 = arith.constant 0 : index
    %c0_0 = arith.constant 0 : index
    %c0_1 = arith.constant 0 : index
    %0 = vector.load %arg1[%c0, %c0_0, %c0_1] : memref<1x8x4xf32, #tpu.memory_space<vmem>>, vector<1x8x4xf32>
    %1 = vector.shape_cast %0 : vector<1x8x4xf32> to vector<8x4xf32>
    %c0_2 = arith.constant 0 : index
    %c0_3 = arith.constant 0 : index
    %2 = vector.load %arg2[%c0_2, %c0_3] : memref<4x32xf32, #tpu.memory_space<vmem>>, vector<4x32xf32>
    %cst = arith.constant dense<0.000000e+00> : vector<8x32xf32>
    %3 = tpu.matmul %1, %2, %cst {dimension_numbers = #tpu.dot_dimension_numbers<[1], [0], [0], [1], [0, 0, 1, 1], [], []>} : vector<8x4xf32>, vector<4x32xf32>, vector<8x32xf32> -> vector<8x32xf32>
    %c0_4 = arith.constant 0 : index
    %c0_5 = arith.constant 0 : index
    %4 = vector.load %arg3[%c0_4, %c0_5] : memref<1x32xf32, #tpu.memory_space<vmem>>, vector<1x32xf32>
    %5 = vector.broadcast %4 : vector<1x32xf32> to vector<8x32xf32>
    %6 = arith.addf %3, %5 : vector<8x32xf32>
    %cst_6 = arith.constant 0.000000e+00 : f32
    %7 = vector.broadcast %cst_6 : f32 to vector<8x32xf32>
    %8 = arith.maximumf %6, %7 : vector<8x32xf32>
    %c0_7 = arith.constant 0 : index
    %c0_8 = arith.constant 0 : index
    %9 = vector.load %arg4[%c0_7, %c0_8] : memref<32x32xf32, #tpu.memory_space<vmem>>, vector<32x32xf32>
    %cst_9 = arith.constant dense<0.000000e+00> : vector<8x32xf32>
    %10 = tpu.matmul %8, %9, %cst_9 {dimension_numbers = #tpu.dot_dimension_numbers<[1], [0], [0], [1], [0, 0, 1, 1], [], []>} : vector<8x32xf32>, vector<32x32xf32>, vector<8x32xf32> -> vector<8x32xf32>
    %c0_10 = arith.constant 0 : index
    %c0_11 = arith.constant 0 : index
    %11 = vector.load %arg5[%c0_10, %c0_11] : memref<1x32xf32, #tpu.memory_space<vmem>>, vector<1x32xf32>
    %12 = vector.broadcast %11 : vector<1x32xf32> to vector<8x32xf32>
    %13 = arith.addf %10, %12 : vector<8x32xf32>
    %c0_12 = arith.constant 0 : index
    %c0_13 = arith.constant 0 : index
    %14 = vector.load %arg6[%c0_12, %c0_13] : memref<8x32xf32, #tpu.memory_space<vmem>>, vector<8x32xf32>
    %15 = arith.addf %13, %14 : vector<8x32xf32>
    %c0_14 = arith.constant 0 : index
    %c0_15 = arith.constant 0 : index
    %c0_16 = arith.constant 0 : index
    %16 = vector.load %arg7[%c0_14, %c0_15, %c0_16] : memref<1x8x32xf32, #tpu.memory_space<vmem>>, vector<1x8x32xf32>
    %17 = vector.shape_cast %16 : vector<1x8x32xf32> to vector<8x32xf32>
    %18 = vector.shape_cast %15 : vector<8x32xf32> to vector<1x8x32xf32>
    tpu.vector_store %arg7[%c0_14, %c0_15, %c0_16], %18 {strides = array<i32>} : memref<1x8x32xf32, #tpu.memory_space<vmem>>, vector<1x8x32xf32>,
    return
  }
  func.func @transform_0(%arg0: i32) -> (i32, i32, i32) {
    %c0_i32 = arith.constant 0 : i32
    %c0_i32_0 = arith.constant 0 : i32
    %c0_i32_1 = arith.constant 0 : i32
    return %arg0, %c0_i32, %c0_i32_0 : i32, i32, i32
  }
  func.func @transform_1(%arg0: i32) -> (i32, i32) {
    %c0_i32 = arith.constant 0 : i32
    %c0_i32_0 = arith.constant 0 : i32
    %c0_i32_1 = arith.constant 0 : i32
    return %c0_i32, %c0_i32_0 : i32, i32
  }
  func.func @transform_2(%arg0: i32) -> (i32, i32) {
    %c0_i32 = arith.constant 0 : i32
    %c0_i32_0 = arith.constant 0 : i32
    %c0_i32_1 = arith.constant 0 : i32
    return %c0_i32, %c0_i32_0 : i32, i32
  }
  func.func @transform_3(%arg0: i32) -> (i32, i32) {
    %c0_i32 = arith.constant 0 : i32
    %c0_i32_0 = arith.constant 0 : i32
    %c0_i32_1 = arith.constant 0 : i32
    return %c0_i32, %c0_i32_0 : i32, i32
  }
  func.func @transform_4(%arg0: i32) -> (i32, i32) {
    %c0_i32 = arith.constant 0 : i32
    %c0_i32_0 = arith.constant 0 : i32
    %c0_i32_1 = arith.constant 0 : i32
    return %c0_i32, %c0_i32_0 : i32, i32
  }
  func.func @transform_5(%arg0: i32) -> (i32, i32) {
    %c0_i32 = arith.constant 0 : i32
    %c0_i32_0 = arith.constant 0 : i32
    %c0_i32_1 = arith.constant 0 : i32
    return %c0_i32, %c0_i32_0 : i32, i32
  }
  func.func @transform_6(%arg0: i32) -> (i32, i32, i32) {
    %c0_i32 = arith.constant 0 : i32
    %c0_i32_0 = arith.constant 0 : i32
    %c0_i32_1 = arith.constant 0 : i32
    return %arg0, %c0_i32, %c0_i32_0 : i32, i32, i32
  }
}

module attributes {stable_mosaic.version = 11 : i64} {
  func.func @_fc_softmax_kernel(%arg0: i32, %arg1: memref<1x8x32xf32, #tpu.memory_space<vmem>>, %arg2: memref<32x6xf32, #tpu.memory_space<vmem>>, %arg3: memref<1x6xf32, #tpu.memory_space<vmem>>, %arg4: memref<1x8x6xf32, #tpu.memory_space<vmem>>) attributes {dimension_semantics = [#tpu.dimension_semantics<parallel>], iteration_bounds = array<i64: 2>, scalar_prefetch = 0 : i64, scratch_operands = 0 : i64, tpu.core_type = #tpu.core_type<tc>, window_params = [{transform_indices = @transform_0, window_bounds = array<i64: 1, 8, 32>}, {pipeline_mode = #tpu.pipeline_mode<synchronous>, transform_indices = @transform_1, window_bounds = array<i64: 32, 6>}, {pipeline_mode = #tpu.pipeline_mode<synchronous>, transform_indices = @transform_2, window_bounds = array<i64: 1, 6>}, {transform_indices = @transform_3, window_bounds = array<i64: 1, 8, 6>}]} {
    %c0 = arith.constant 0 : index
    %c0_0 = arith.constant 0 : index
    %c0_1 = arith.constant 0 : index
    %0 = vector.load %arg1[%c0, %c0_0, %c0_1] : memref<1x8x32xf32, #tpu.memory_space<vmem>>, vector<1x8x32xf32>
    %1 = vector.shape_cast %0 : vector<1x8x32xf32> to vector<8x32xf32>
    %c0_2 = arith.constant 0 : index
    %c0_3 = arith.constant 0 : index
    %2 = vector.load %arg2[%c0_2, %c0_3] : memref<32x6xf32, #tpu.memory_space<vmem>>, vector<32x6xf32>
    %cst = arith.constant dense<0.000000e+00> : vector<8x6xf32>
    %3 = tpu.matmul %1, %2, %cst {dimension_numbers = #tpu.dot_dimension_numbers<[1], [0], [0], [1], [0, 0, 1, 1], [], []>} : vector<8x32xf32>, vector<32x6xf32>, vector<8x6xf32> -> vector<8x6xf32>
    %c0_4 = arith.constant 0 : index
    %c0_5 = arith.constant 0 : index
    %4 = vector.load %arg3[%c0_4, %c0_5] : memref<1x6xf32, #tpu.memory_space<vmem>>, vector<1x6xf32>
    %5 = vector.broadcast %4 : vector<1x6xf32> to vector<8x6xf32>
    %6 = arith.addf %3, %5 : vector<8x6xf32>
    %cst_6 = arith.constant dense<0xFF800000> : vector<8xf32>
    %7 = vector.multi_reduction <maximumf>, %6, %cst_6 [1] : vector<8x6xf32> to vector<8xf32>
    %8 = vector.shape_cast %7 : vector<8xf32> to vector<8x1xf32>
    %9 = vector.broadcast %8 : vector<8x1xf32> to vector<8x6xf32>
    %10 = arith.subf %6, %9 : vector<8x6xf32>
    %11 = math.exp %10 : vector<8x6xf32>
    %cst_7 = arith.constant dense<0.000000e+00> : vector<8xf32>
    %12 = vector.multi_reduction <add>, %11, %cst_7 [1] : vector<8x6xf32> to vector<8xf32>
    %13 = vector.shape_cast %12 : vector<8xf32> to vector<8x1xf32>
    %14 = tpu.reciprocal %13 : vector<8x1xf32> -> vector<8x1xf32>
    %15 = vector.broadcast %14 : vector<8x1xf32> to vector<8x6xf32>
    %16 = arith.mulf %11, %15 : vector<8x6xf32>
    %c0_8 = arith.constant 0 : index
    %c0_9 = arith.constant 0 : index
    %c0_10 = arith.constant 0 : index
    %17 = vector.load %arg4[%c0_8, %c0_9, %c0_10] : memref<1x8x6xf32, #tpu.memory_space<vmem>>, vector<1x8x6xf32>
    %18 = vector.shape_cast %17 : vector<1x8x6xf32> to vector<8x6xf32>
    %19 = vector.shape_cast %16 : vector<8x6xf32> to vector<1x8x6xf32>
    tpu.vector_store %arg4[%c0_8, %c0_9, %c0_10], %19 {strides = array<i32>} : memref<1x8x6xf32, #tpu.memory_space<vmem>>, vector<1x8x6xf32>,
    return
  }
  func.func @transform_0(%arg0: i32) -> (i32, i32, i32) {
    %c0_i32 = arith.constant 0 : i32
    %c0_i32_0 = arith.constant 0 : i32
    %c0_i32_1 = arith.constant 0 : i32
    return %arg0, %c0_i32, %c0_i32_0 : i32, i32, i32
  }
  func.func @transform_1(%arg0: i32) -> (i32, i32) {
    %c0_i32 = arith.constant 0 : i32
    %c0_i32_0 = arith.constant 0 : i32
    %c0_i32_1 = arith.constant 0 : i32
    return %c0_i32, %c0_i32_0 : i32, i32
  }
  func.func @transform_2(%arg0: i32) -> (i32, i32) {
    %c0_i32 = arith.constant 0 : i32
    %c0_i32_0 = arith.constant 0 : i32
    %c0_i32_1 = arith.constant 0 : i32
    return %c0_i32, %c0_i32_0 : i32, i32
  }
  func.func @transform_3(%arg0: i32) -> (i32, i32, i32) {
    %c0_i32 = arith.constant 0 : i32
    %c0_i32_0 = arith.constant 0 : i32
    %c0_i32_1 = arith.constant 0 : i32
    return %arg0, %c0_i32, %c0_i32_0 : i32, i32, i32
  }
}

module attributes {stable_mosaic.version = 11 : i64} {
  func.func @_encoder_layer_kernel(%arg0: i32, %arg1: memref<1x8x32xf32, #tpu.memory_space<vmem>>, %arg2: memref<32x96xf32, #tpu.memory_space<vmem>>, %arg3: memref<1x96xf32, #tpu.memory_space<vmem>>, %arg4: memref<32x32xf32, #tpu.memory_space<vmem>>, %arg5: memref<1x32xf32, #tpu.memory_space<vmem>>, %arg6: memref<1x32xf32, #tpu.memory_space<vmem>>, %arg7: memref<1x32xf32, #tpu.memory_space<vmem>>, %arg8: memref<32x64xf32, #tpu.memory_space<vmem>>, %arg9: memref<1x64xf32, #tpu.memory_space<vmem>>, %arg10: memref<64x32xf32, #tpu.memory_space<vmem>>, %arg11: memref<1x32xf32, #tpu.memory_space<vmem>>, %arg12: memref<1x32xf32, #tpu.memory_space<vmem>>, %arg13: memref<1x32xf32, #tpu.memory_space<vmem>>, %arg14: memref<1x8x32xf32, #tpu.memory_space<vmem>>) attributes {dimension_semantics = [#tpu.dimension_semantics<parallel>], iteration_bounds = array<i64: 2>, scalar_prefetch = 0 : i64, scratch_operands = 0 : i64, tpu.core_type = #tpu.core_type<tc>, window_params = [{transform_indices = @transform_0, window_bounds = array<i64: 1, 8, 32>}, {pipeline_mode = #tpu.pipeline_mode<synchronous>, transform_indices = @transform_1, window_bounds = array<i64: 32, 96>}, {pipeline_mode = #tpu.pipeline_mode<synchronous>, transform_indices = @transform_2, window_bounds = array<i64: 1, 96>}, {pipeline_mode = #tpu.pipeline_mode<synchronous>, transform_indices = @transform_3, window_bounds = array<i64: 32, 32>}, {pipeline_mode = #tpu.pipeline_mode<synchronous>, transform_indices = @transform_4, window_bounds = array<i64: 1, 32>}, {pipeline_mode = #tpu.pipeline_mode<synchronous>, transform_indices = @transform_5, window_bounds = array<i64: 1, 32>}, {pipeline_mode = #tpu.pipeline_mode<synchronous>, transform_indices = @transform_6, window_bounds = array<i64: 1, 32>}, {pipeline_mode = #tpu.pipeline_mode<synchronous>, transform_indices = @transform_7, window_bounds = array<i64: 32, 64>}, {pipeline_mode = #tpu.pipeline_mode<synchronous>, transform_indices = @transform_8, window_bounds = array<i64: 1, 64>}, {pipeline_mode = #tpu.pipeline_mode<synchronous>, transform_indices = @transform_9, window_bounds = array<i64: 64, 32>}, {pipeline_mode = #tpu.pipeline_mode<synchronous>, transform_indices = @transform_10, window_bounds = array<i64: 1, 32>}, {pipeline_mode = #tpu.pipeline_mode<synchronous>, transform_indices = @transform_11, window_bounds = array<i64: 1, 32>}, {pipeline_mode = #tpu.pipeline_mode<synchronous>, transform_indices = @transform_12, window_bounds = array<i64: 1, 32>}, {transform_indices = @transform_13, window_bounds = array<i64: 1, 8, 32>}]} {
    %c0 = arith.constant 0 : index
    %c0_0 = arith.constant 0 : index
    %c0_1 = arith.constant 0 : index
    %0 = vector.load %arg1[%c0, %c0_0, %c0_1] : memref<1x8x32xf32, #tpu.memory_space<vmem>>, vector<1x8x32xf32>
    %1 = vector.shape_cast %0 : vector<1x8x32xf32> to vector<8x32xf32>
    %c0_2 = arith.constant 0 : index
    %c0_3 = arith.constant 0 : index
    %2 = vector.load %arg2[%c0_2, %c0_3] : memref<32x96xf32, #tpu.memory_space<vmem>>, vector<32x96xf32>
    %cst = arith.constant dense<0.000000e+00> : vector<8x96xf32>
    %3 = tpu.matmul %1, %2, %cst {dimension_numbers = #tpu.dot_dimension_numbers<[1], [0], [0], [1], [0, 0, 1, 1], [], []>} : vector<8x32xf32>, vector<32x96xf32>, vector<8x96xf32> -> vector<8x96xf32>
    %c0_4 = arith.constant 0 : index
    %c0_5 = arith.constant 0 : index
    %4 = vector.load %arg3[%c0_4, %c0_5] : memref<1x96xf32, #tpu.memory_space<vmem>>, vector<1x96xf32>
    %5 = vector.broadcast %4 : vector<1x96xf32> to vector<8x96xf32>
    %6 = arith.addf %3, %5 : vector<8x96xf32>
    %7 = vector.extract_strided_slice %6 {offsets = [0, 0], sizes = [8, 32], strides = [1, 1]} : vector<8x96xf32> to vector<8x32xf32>
    %8 = vector.extract_strided_slice %6 {offsets = [0, 32], sizes = [8, 32], strides = [1, 1]} : vector<8x96xf32> to vector<8x32xf32>
    %9 = vector.extract_strided_slice %6 {offsets = [0, 64], sizes = [8, 32], strides = [1, 1]} : vector<8x96xf32> to vector<8x32xf32>
    %10 = vector.extract_strided_slice %7 {offsets = [0, 0], sizes = [8, 8], strides = [1, 1]} : vector<8x32xf32> to vector<8x8xf32>
    %11 = vector.extract_strided_slice %8 {offsets = [0, 0], sizes = [8, 8], strides = [1, 1]} : vector<8x32xf32> to vector<8x8xf32>
    %12 = vector.extract_strided_slice %9 {offsets = [0, 0], sizes = [8, 8], strides = [1, 1]} : vector<8x32xf32> to vector<8x8xf32>
    %cst_6 = arith.constant dense<0.000000e+00> : vector<8x8xf32>
    %13 = tpu.matmul %10, %11, %cst_6 {dimension_numbers = #tpu.dot_dimension_numbers<[1], [1], [0], [0], [0, 0, 1, 0], [], []>} : vector<8x8xf32>, vector<8x8xf32>, vector<8x8xf32> -> vector<8x8xf32>
    %cst_7 = arith.constant 0.353553385 : f32
    %14 = vector.broadcast %cst_7 : f32 to vector<8x8xf32>
    %15 = arith.mulf %13, %14 : vector<8x8xf32>
    %cst_8 = arith.constant dense<0xFF800000> : vector<8xf32>
    %16 = vector.multi_reduction <maximumf>, %15, %cst_8 [1] : vector<8x8xf32> to vector<8xf32>
    %17 = vector.shape_cast %16 : vector<8xf32> to vector<8x1xf32>
    %18 = vector.broadcast %17 : vector<8x1xf32> to vector<8x8xf32>
    %19 = arith.subf %15, %18 : vector<8x8xf32>
    %20 = math.exp %19 : vector<8x8xf32>
    %cst_9 = arith.constant dense<0.000000e+00> : vector<8xf32>
    %21 = vector.multi_reduction <add>, %20, %cst_9 [1] : vector<8x8xf32> to vector<8xf32>
    %22 = vector.shape_cast %21 : vector<8xf32> to vector<8x1xf32>
    %23 = tpu.reciprocal %22 {approx = true} : vector<8x1xf32> -> vector<8x1xf32>
    %24 = vector.broadcast %23 : vector<8x1xf32> to vector<8x8xf32>
    %25 = arith.mulf %20, %24 : vector<8x8xf32>
    %cst_10 = arith.constant dense<0.000000e+00> : vector<8x8xf32>
    %26 = tpu.matmul %25, %12, %cst_10 {dimension_numbers = #tpu.dot_dimension_numbers<[1], [0], [0], [1], [0, 0, 1, 1], [], []>} : vector<8x8xf32>, vector<8x8xf32>, vector<8x8xf32> -> vector<8x8xf32>
    %27 = vector.extract_strided_slice %7 {offsets = [0, 8], sizes = [8, 8], strides = [1, 1]} : vector<8x32xf32> to vector<8x8xf32>
    %28 = vector.extract_strided_slice %8 {offsets = [0, 8], sizes = [8, 8], strides = [1, 1]} : vector<8x32xf32> to vector<8x8xf32>
    %29 = vector.extract_strided_slice %9 {offsets = [0, 8], sizes = [8, 8], strides = [1, 1]} : vector<8x32xf32> to vector<8x8xf32>
    %cst_11 = arith.constant dense<0.000000e+00> : vector<8x8xf32>
    %30 = tpu.matmul %27, %28, %cst_11 {dimension_numbers = #tpu.dot_dimension_numbers<[1], [1], [0], [0], [0, 0, 1, 0], [], []>} : vector<8x8xf32>, vector<8x8xf32>, vector<8x8xf32> -> vector<8x8xf32>
    %cst_12 = arith.constant 0.353553385 : f32
    %31 = vector.broadcast %cst_12 : f32 to vector<8x8xf32>
    %32 = arith.mulf %30, %31 : vector<8x8xf32>
    %cst_13 = arith.constant dense<0xFF800000> : vector<8xf32>
    %33 = vector.multi_reduction <maximumf>, %32, %cst_13 [1] : vector<8x8xf32> to vector<8xf32>
    %34 = vector.shape_cast %33 : vector<8xf32> to vector<8x1xf32>
    %35 = vector.broadcast %34 : vector<8x1xf32> to vector<8x8xf32>
    %36 = arith.subf %32, %35 : vector<8x8xf32>
    %37 = math.exp %36 : vector<8x8xf32>
    %cst_14 = arith.constant dense<0.000000e+00> : vector<8xf32>
    %38 = vector.multi_reduction <add>, %37, %cst_14 [1] : vector<8x8xf32> to vector<8xf32>
    %39 = vector.shape_cast %38 : vector<8xf32> to vector<8x1xf32>
    %40 = tpu.reciprocal %39 {approx = true} : vector<8x1xf32> -> vector<8x1xf32>
    %41 = vector.broadcast %40 : vector<8x1xf32> to vector<8x8xf32>
    %42 = arith.mulf %37, %41 : vector<8x8xf32>
    %cst_15 = arith.constant dense<0.000000e+00> : vector<8x8xf32>
    %43 = tpu.matmul %42, %29, %cst_15 {dimension_numbers = #tpu.dot_dimension_numbers<[1], [0], [0], [1], [0, 0, 1, 1], [], []>} : vector<8x8xf32>, vector<8x8xf32>, vector<8x8xf32> -> vector<8x8xf32>
    %44 = vector.extract_strided_slice %7 {offsets = [0, 16], sizes = [8, 8], strides = [1, 1]} : vector<8x32xf32> to vector<8x8xf32>
    %45 = vector.extract_strided_slice %8 {offsets = [0, 16], sizes = [8, 8], strides = [1, 1]} : vector<8x32xf32> to vector<8x8xf32>
    %46 = vector.extract_strided_slice %9 {offsets = [0, 16], sizes = [8, 8], strides = [1, 1]} : vector<8x32xf32> to vector<8x8xf32>
    %cst_16 = arith.constant dense<0.000000e+00> : vector<8x8xf32>
    %47 = tpu.matmul %44, %45, %cst_16 {dimension_numbers = #tpu.dot_dimension_numbers<[1], [1], [0], [0], [0, 0, 1, 0], [], []>} : vector<8x8xf32>, vector<8x8xf32>, vector<8x8xf32> -> vector<8x8xf32>
    %cst_17 = arith.constant 0.353553385 : f32
    %48 = vector.broadcast %cst_17 : f32 to vector<8x8xf32>
    %49 = arith.mulf %47, %48 : vector<8x8xf32>
    %cst_18 = arith.constant dense<0xFF800000> : vector<8xf32>
    %50 = vector.multi_reduction <maximumf>, %49, %cst_18 [1] : vector<8x8xf32> to vector<8xf32>
    %51 = vector.shape_cast %50 : vector<8xf32> to vector<8x1xf32>
    %52 = vector.broadcast %51 : vector<8x1xf32> to vector<8x8xf32>
    %53 = arith.subf %49, %52 : vector<8x8xf32>
    %54 = math.exp %53 : vector<8x8xf32>
    %cst_19 = arith.constant dense<0.000000e+00> : vector<8xf32>
    %55 = vector.multi_reduction <add>, %54, %cst_19 [1] : vector<8x8xf32> to vector<8xf32>
    %56 = vector.shape_cast %55 : vector<8xf32> to vector<8x1xf32>
    %57 = tpu.reciprocal %56 {approx = true} : vector<8x1xf32> -> vector<8x1xf32>
    %58 = vector.broadcast %57 : vector<8x1xf32> to vector<8x8xf32>
    %59 = arith.mulf %54, %58 : vector<8x8xf32>
    %cst_20 = arith.constant dense<0.000000e+00> : vector<8x8xf32>
    %60 = tpu.matmul %59, %46, %cst_20 {dimension_numbers = #tpu.dot_dimension_numbers<[1], [0], [0], [1], [0, 0, 1, 1], [], []>} : vector<8x8xf32>, vector<8x8xf32>, vector<8x8xf32> -> vector<8x8xf32>
    %61 = vector.extract_strided_slice %7 {offsets = [0, 24], sizes = [8, 8], strides = [1, 1]} : vector<8x32xf32> to vector<8x8xf32>
    %62 = vector.extract_strided_slice %8 {offsets = [0, 24], sizes = [8, 8], strides = [1, 1]} : vector<8x32xf32> to vector<8x8xf32>
    %63 = vector.extract_strided_slice %9 {offsets = [0, 24], sizes = [8, 8], strides = [1, 1]} : vector<8x32xf32> to vector<8x8xf32>
    %cst_21 = arith.constant dense<0.000000e+00> : vector<8x8xf32>
    %64 = tpu.matmul %61, %62, %cst_21 {dimension_numbers = #tpu.dot_dimension_numbers<[1], [1], [0], [0], [0, 0, 1, 0], [], []>} : vector<8x8xf32>, vector<8x8xf32>, vector<8x8xf32> -> vector<8x8xf32>
    %cst_22 = arith.constant 0.353553385 : f32
    %65 = vector.broadcast %cst_22 : f32 to vector<8x8xf32>
    %66 = arith.mulf %64, %65 : vector<8x8xf32>
    %cst_23 = arith.constant dense<0xFF800000> : vector<8xf32>
    %67 = vector.multi_reduction <maximumf>, %66, %cst_23 [1] : vector<8x8xf32> to vector<8xf32>
    %68 = vector.shape_cast %67 : vector<8xf32> to vector<8x1xf32>
    %69 = vector.broadcast %68 : vector<8x1xf32> to vector<8x8xf32>
    %70 = arith.subf %66, %69 : vector<8x8xf32>
    %71 = math.exp %70 : vector<8x8xf32>
    %cst_24 = arith.constant dense<0.000000e+00> : vector<8xf32>
    %72 = vector.multi_reduction <add>, %71, %cst_24 [1] : vector<8x8xf32> to vector<8xf32>
    %73 = vector.shape_cast %72 : vector<8xf32> to vector<8x1xf32>
    %74 = tpu.reciprocal %73 {approx = true} : vector<8x1xf32> -> vector<8x1xf32>
    %75 = vector.broadcast %74 : vector<8x1xf32> to vector<8x8xf32>
    %76 = arith.mulf %71, %75 : vector<8x8xf32>
    %cst_25 = arith.constant dense<0.000000e+00> : vector<8x8xf32>
    %77 = tpu.matmul %76, %63, %cst_25 {dimension_numbers = #tpu.dot_dimension_numbers<[1], [0], [0], [1], [0, 0, 1, 1], [], []>} : vector<8x8xf32>, vector<8x8xf32>, vector<8x8xf32> -> vector<8x8xf32>
    %78 = tpu.concatenate %26, %43, %60, %77 in 1 : vector<8x8xf32>, vector<8x8xf32>, vector<8x8xf32>, vector<8x8xf32> -> vector<8x32xf32>
    %c0_26 = arith.constant 0 : index
    %c0_27 = arith.constant 0 : index
    %79 = vector.load %arg4[%c0_26, %c0_27] : memref<32x32xf32, #tpu.memory_space<vmem>>, vector<32x32xf32>
    %cst_28 = arith.constant dense<0.000000e+00> : vector<8x32xf32>
    %80 = tpu.matmul %78, %79, %cst_28 {dimension_numbers = #tpu.dot_dimension_numbers<[1], [0], [0], [1], [0, 0, 1, 1], [], []>} : vector<8x32xf32>, vector<32x32xf32>, vector<8x32xf32> -> vector<8x32xf32>
    %c0_29 = arith.constant 0 : index
    %c0_30 = arith.constant 0 : index
    %81 = vector.load %arg5[%c0_29, %c0_30] : memref<1x32xf32, #tpu.memory_space<vmem>>, vector<1x32xf32>
    %82 = vector.broadcast %81 : vector<1x32xf32> to vector<8x32xf32>
    %83 = arith.addf %80, %82 : vector<8x32xf32>
    %84 = arith.addf %1, %83 : vector<8x32xf32>
    %cst_31 = arith.constant dense<0.000000e+00> : vector<8xf32>
    %85 = vector.multi_reduction <add>, %84, %cst_31 [1] : vector<8x32xf32> to vector<8xf32>
    %86 = vector.shape_cast %85 : vector<8xf32> to vector<8x1xf32>
    %cst_32 = arith.constant 3.200000e+01 : f32
    %87 = vector.broadcast %cst_32 : f32 to vector<8x1xf32>
    %88 = arith.divf %86, %87 : vector<8x1xf32>
    %89 = vector.broadcast %88 : vector<8x1xf32> to vector<8x32xf32>
    %90 = arith.subf %84, %89 : vector<8x32xf32>
    %91 = arith.mulf %90, %90 : vector<8x32xf32>
    %cst_33 = arith.constant dense<0.000000e+00> : vector<8xf32>
    %92 = vector.multi_reduction <add>, %91, %cst_33 [1] : vector<8x32xf32> to vector<8xf32>
    %93 = vector.shape_cast %92 : vector<8xf32> to vector<8x1xf32>
    %cst_34 = arith.constant 3.200000e+01 : f32
    %94 = vector.broadcast %cst_34 : f32 to vector<8x1xf32>
    %95 = arith.divf %93, %94 : vector<8x1xf32>
    %cst_35 = arith.constant 9.99999974E-6 : f32
    %96 = vector.broadcast %cst_35 : f32 to vector<8x1xf32>
    %97 = arith.addf %95, %96 : vector<8x1xf32>
    %98 = math.rsqrt %97 : vector<8x1xf32>
    %99 = vector.broadcast %98 : vector<8x1xf32> to vector<8x32xf32>
    %100 = arith.mulf %90, %99 : vector<8x32xf32>
    %c0_36 = arith.constant 0 : index
    %c0_37 = arith.constant 0 : index
    %101 = vector.load %arg6[%c0_36, %c0_37] : memref<1x32xf32, #tpu.memory_space<vmem>>, vector<1x32xf32>
    %102 = vector.broadcast %101 : vector<1x32xf32> to vector<8x32xf32>
    %103 = arith.mulf %100, %102 : vector<8x32xf32>
    %c0_38 = arith.constant 0 : index
    %c0_39 = arith.constant 0 : index
    %104 = vector.load %arg7[%c0_38, %c0_39] : memref<1x32xf32, #tpu.memory_space<vmem>>, vector<1x32xf32>
    %105 = vector.broadcast %104 : vector<1x32xf32> to vector<8x32xf32>
    %106 = arith.addf %103, %105 : vector<8x32xf32>
    %c0_40 = arith.constant 0 : index
    %c0_41 = arith.constant 0 : index
    %107 = vector.load %arg8[%c0_40, %c0_41] : memref<32x64xf32, #tpu.memory_space<vmem>>, vector<32x64xf32>
    %cst_42 = arith.constant dense<0.000000e+00> : vector<8x64xf32>
    %108 = tpu.matmul %106, %107, %cst_42 {dimension_numbers = #tpu.dot_dimension_numbers<[1], [0], [0], [1], [0, 0, 1, 1], [], []>} : vector<8x32xf32>, vector<32x64xf32>, vector<8x64xf32> -> vector<8x64xf32>
    %c0_43 = arith.constant 0 : index
    %c0_44 = arith.constant 0 : index
    %109 = vector.load %arg9[%c0_43, %c0_44] : memref<1x64xf32, #tpu.memory_space<vmem>>, vector<1x64xf32>
    %110 = vector.broadcast %109 : vector<1x64xf32> to vector<8x64xf32>
    %111 = arith.addf %108, %110 : vector<8x64xf32>
    %cst_45 = arith.constant 0.000000e+00 : f32
    %112 = vector.broadcast %cst_45 : f32 to vector<8x64xf32>
    %113 = arith.maximumf %111, %112 : vector<8x64xf32>
    %c0_46 = arith.constant 0 : index
    %c0_47 = arith.constant 0 : index
    %114 = vector.load %arg10[%c0_46, %c0_47] : memref<64x32xf32, #tpu.memory_space<vmem>>, vector<64x32xf32>
    %cst_48 = arith.constant dense<0.000000e+00> : vector<8x32xf32>
    %115 = tpu.matmul %113, %114, %cst_48 {dimension_numbers = #tpu.dot_dimension_numbers<[1], [0], [0], [1], [0, 0, 1, 1], [], []>} : vector<8x64xf32>, vector<64x32xf32>, vector<8x32xf32> -> vector<8x32xf32>
    %c0_49 = arith.constant 0 : index
    %c0_50 = arith.constant 0 : index
    %116 = vector.load %arg11[%c0_49, %c0_50] : memref<1x32xf32, #tpu.memory_space<vmem>>, vector<1x32xf32>
    %117 = vector.broadcast %116 : vector<1x32xf32> to vector<8x32xf32>
    %118 = arith.addf %115, %117 : vector<8x32xf32>
    %119 = arith.addf %106, %118 : vector<8x32xf32>
    %cst_51 = arith.constant dense<0.000000e+00> : vector<8xf32>
    %120 = vector.multi_reduction <add>, %119, %cst_51 [1] : vector<8x32xf32> to vector<8xf32>
    %121 = vector.shape_cast %120 : vector<8xf32> to vector<8x1xf32>
    %cst_52 = arith.constant 3.200000e+01 : f32
    %122 = vector.broadcast %cst_52 : f32 to vector<8x1xf32>
    %123 = arith.divf %121, %122 : vector<8x1xf32>
    %124 = vector.broadcast %123 : vector<8x1xf32> to vector<8x32xf32>
    %125 = arith.subf %119, %124 : vector<8x32xf32>
    %126 = arith.mulf %125, %125 : vector<8x32xf32>
    %cst_53 = arith.constant dense<0.000000e+00> : vector<8xf32>
    %127 = vector.multi_reduction <add>, %126, %cst_53 [1] : vector<8x32xf32> to vector<8xf32>
    %128 = vector.shape_cast %127 : vector<8xf32> to vector<8x1xf32>
    %cst_54 = arith.constant 3.200000e+01 : f32
    %129 = vector.broadcast %cst_54 : f32 to vector<8x1xf32>
    %130 = arith.divf %128, %129 : vector<8x1xf32>
    %cst_55 = arith.constant 9.99999974E-6 : f32
    %131 = vector.broadcast %cst_55 : f32 to vector<8x1xf32>
    %132 = arith.addf %130, %131 : vector<8x1xf32>
    %133 = math.rsqrt %132 : vector<8x1xf32>
    %134 = vector.broadcast %133 : vector<8x1xf32> to vector<8x32xf32>
    %135 = arith.mulf %125, %134 : vector<8x32xf32>
    %c0_56 = arith.constant 0 : index
    %c0_57 = arith.constant 0 : index
    %136 = vector.load %arg12[%c0_56, %c0_57] : memref<1x32xf32, #tpu.memory_space<vmem>>, vector<1x32xf32>
    %137 = vector.broadcast %136 : vector<1x32xf32> to vector<8x32xf32>
    %138 = arith.mulf %135, %137 : vector<8x32xf32>
    %c0_58 = arith.constant 0 : index
    %c0_59 = arith.constant 0 : index
    %139 = vector.load %arg13[%c0_58, %c0_59] : memref<1x32xf32, #tpu.memory_space<vmem>>, vector<1x32xf32>
    %140 = vector.broadcast %139 : vector<1x32xf32> to vector<8x32xf32>
    %141 = arith.addf %138, %140 : vector<8x32xf32>
    %c0_60 = arith.constant 0 : index
    %c0_61 = arith.constant 0 : index
    %c0_62 = arith.constant 0 : index
    %142 = vector.load %arg14[%c0_60, %c0_61, %c0_62] : memref<1x8x32xf32, #tpu.memory_space<vmem>>, vector<1x8x32xf32>
    %143 = vector.shape_cast %142 : vector<1x8x32xf32> to vector<8x32xf32>
    %144 = vector.shape_cast %141 : vector<8x32xf32> to vector<1x8x32xf32>
    tpu.vector_store %arg14[%c0_60, %c0_61, %c0_62], %144 {strides = array<i32>} : memref<1x8x32xf32, #tpu.memory_space<vmem>>, vector<1x8x32xf32>,
    return
  }
  func.func @transform_0(%arg0: i32) -> (i32, i32, i32) {
    %c0_i32 = arith.constant 0 : i32
    %c0_i32_0 = arith.constant 0 : i32
    %c0_i32_1 = arith.constant 0 : i32
    return %arg0, %c0_i32, %c0_i32_0 : i32, i32, i32
  }
  func.func @transform_1(%arg0: i32) -> (i32, i32) {
    %c0_i32 = arith.constant 0 : i32
    %c0_i32_0 = arith.constant 0 : i32
    %c0_i32_1 = arith.constant 0 : i32
    return %c0_i32, %c0_i32_0 : i32, i32
  }
  func.func @transform_2(%arg0: i32) -> (i32, i32) {
    %c0_i32 = arith.constant 0 : i32
    %c0_i32_0 = arith.constant 0 : i32
    %c0_i32_1 = arith.constant 0 : i32
    return %c0_i32, %c0_i32_0 : i32, i32
  }
  func.func @transform_3(%arg0: i32) -> (i32, i32) {
    %c0_i32 = arith.constant 0 : i32
    %c0_i32_0 = arith.constant 0 : i32
    %c0_i32_1 = arith.constant 0 : i32
    return %c0_i32, %c0_i32_0 : i32, i32
  }
  func.func @transform_4(%arg0: i32) -> (i32, i32) {
    %c0_i32 = arith.constant 0 : i32
    %c0_i32_0 = arith.constant 0 : i32
    %c0_i32_1 = arith.constant 0 : i32
    return %c0_i32, %c0_i32_0 : i32, i32
  }
  func.func @transform_5(%arg0: i32) -> (i32, i32) {
    %c0_i32 = arith.constant 0 : i32
    %c0_i32_0 = arith.constant 0 : i32
    %c0_i32_1 = arith.constant 0 : i32
    return %c0_i32, %c0_i32_0 : i32, i32
  }
  func.func @transform_6(%arg0: i32) -> (i32, i32) {
    %c0_i32 = arith.constant 0 : i32
    %c0_i32_0 = arith.constant 0 : i32
    %c0_i32_1 = arith.constant 0 : i32
    return %c0_i32, %c0_i32_0 : i32, i32
  }
  func.func @transform_7(%arg0: i32) -> (i32, i32) {
    %c0_i32 = arith.constant 0 : i32
    %c0_i32_0 = arith.constant 0 : i32
    %c0_i32_1 = arith.constant 0 : i32
    return %c0_i32, %c0_i32_0 : i32, i32
  }
  func.func @transform_8(%arg0: i32) -> (i32, i32) {
    %c0_i32 = arith.constant 0 : i32
    %c0_i32_0 = arith.constant 0 : i32
    %c0_i32_1 = arith.constant 0 : i32
    return %c0_i32, %c0_i32_0 : i32, i32
  }
  func.func @transform_9(%arg0: i32) -> (i32, i32) {
    %c0_i32 = arith.constant 0 : i32
    %c0_i32_0 = arith.constant 0 : i32
    %c0_i32_1 = arith.constant 0 : i32
    return %c0_i32, %c0_i32_0 : i32, i32
  }
  func.func @transform_10(%arg0: i32) -> (i32, i32) {
    %c0_i32 = arith.constant 0 : i32
    %c0_i32_0 = arith.constant 0 : i32
    %c0_i32_1 = arith.constant 0 : i32
    return %c0_i32, %c0_i32_0 : i32, i32
  }
  func.func @transform_11(%arg0: i32) -> (i32, i32) {
    %c0_i32 = arith.constant 0 : i32
    %c0_i32_0 = arith.constant 0 : i32
    %c0_i32_1 = arith.constant 0 : i32
    return %c0_i32, %c0_i32_0 : i32, i32
  }
  func.func @transform_12(%arg0: i32) -> (i32, i32) {
    %c0_i32 = arith.constant 0 : i32
    %c0_i32_0 = arith.constant 0 : i32
    %c0_i32_1 = arith.constant 0 : i32
    return %c0_i32, %c0_i32_0 : i32, i32
  }
  func.func @transform_13(%arg0: i32) -> (i32, i32, i32) {
    %c0_i32 = arith.constant 0 : i32
    %c0_i32_0 = arith.constant 0 : i32
    %c0_i32_1 = arith.constant 0 : i32
    return %arg0, %c0_i32, %c0_i32_0 : i32, i32, i32
  }
}

</mosaic_0001>

<bundles_post_ra>
// kernel: transformer_policy_forward.4
= control target key start
LH: loop header
LB: loop body
LE: loop exit
PB: predicated region body
PF: predicated region fallthrough
CT: control target
= control target key end

     0   :  { %s435_s21 = smov 0   ;;  %s476_s0 = inlined_call_operand.vmem [shape: f32[2,8,4], index: 0, kind: input, shape index: {}]   ;;  %s477_s1 = inlined_call_operand.vmem [shape: f32[4,32], index: 1, kind: input, shape index: {}]   ;;  %s478_s2 = inlined_call_operand.vmem [shape: f32[1,32], index: 2, kind: input, shape index: {}]   ;;  %s479_s3 = inlined_call_operand.vmem [shape: f32[32,32], index: 3, kind: input, shape index: {}]   ;;  %s480_s4 = inlined_call_operand.vmem [shape: f32[1,32], index: 4, kind: input, shape index: {}]   ;;  %s481_s5 = inlined_call_operand.vmem [shape: f32[8,32], index: 5, kind: input, shape index: {}]   ;;  %s482_s6 = inlined_call_operand.vmem [shape: f32[2,8,32], index: 6, kind: output, shape index: {}]  }
   0x1 LB: > { %s370_s22 = sadd.s32 4294967295, %s398_s21   ;;  %p374_p0 = scmp.ge.s32.totalorder %s398_s21, 1  ;;  %s398_s21 = sphi %s435_s21, %s16_s21  }
   0x2   : > { %p211_p1 = scmp.lt.s32.totalorder %s398_s21, 3 }
   0x4   : > { %p212_p2 = pnand %p374_p0, %p211_p1 }
   0x5   : > { %p239_p3 = scmp.lt.s32.totalorder (!%p212_p2), %s370_s22, 1 }
   0x6   : > { %215 = sbr.rel (%p212_p2) target bundleno = 276 (0x114), region = 44 }
   0xb   : > { %v248_v0 = vld [vmem:[%s477_s1] sm:$0xf]  ;;  %vm257_vm0 = vcmask 1043456   ;;  %v285_v1 = vld [vmem:[%s479_s3 + $0x18] sm:$0xff]  ;;  %s484_s22 = smov (!%p239_p3, %s370_s22), 1  ;;  %vm253_vm1 = vcmask 31744  }
   0xc   : > { %377 = vmatpush.msk.msra.mxu0 %vm257_vm0, %v248_v0  ;;  %306 = vmatpush.msra.mxu1 %v285_v1  ;;  %s375_s27 = sshll.u32 %s484_s22, 3  ;;  %v284_v3 = vld [vmem:[%s479_s3 + $0x10] sm:$0xff]  ;;  %v283_v4 = vld [vmem:[%s479_s3 + $0x8] sm:$0xff]  ;;  %v282_v5 = vld [vmem:[%s479_s3] sm:$0xff]  ;;  %vm290_vm2 = vcmask 261120  }
   0xd   : > { %s242_s30 = scalar_lea.vmem %s476_s0, %s375_s27  ;;  %v390_v6 = vld [vmem:[%s478_s2] ss:$0 sm:$0xff]  ;;  %s246_s22 = scalar_lea.vmem %s482_s6, %s375_s27 }
   0xe   : > { %v247_v2 = vld [vmem:[%s242_s30] sm:$0xff]  ;;  %307 = vmatpush.msra.mxu1 %v284_v3 }
   0xf   : > { %378 = vmatmul.msk.f32.vlgmr.msra.gmra.mxu0 %vm253_vm1, %v247_v2  ;;  %v391_v10 = vld [vmem:[%s480_s4] ss:$0 sm:$0xff] }
  0x10   : > { %308 = vmatpush.msra.mxu1 %v283_v4  ;;  %v314_v12 = vld [vmem:[%s481_s5] sm:$0xff] }
  0x12   : > { %309 = vmatpush.msra.mxu1 %v282_v5 }
  0x8c   : > { %v278_v7 = vpop.f32.mrf.mxu0 }
  0x8d   : > { %v279_v8 = vadd.f32 %v390_v6, %v278_v7 }
  0x8f   : > { %v281_v9 = vmax.f32 %v279_v8, 0.0 }
  0x91   : > { %379 = vmatmul.msk.f32.vlgmr.msra.gmra.mxu1 %vm290_vm2, %v281_v9 }
 0x10e   : > { %v311_v11 = vpop.f32.mrf.mxu1 }
 0x10f   : > { %v312_v13 = vadd.f32 %v391_v10, %v311_v11 }
 0x111   : > { %v315_v14 = vadd.f32 %v314_v12, %v312_v13 }
 0x113   : > { %316 = vst.msk [vmem:[%s246_s22] sm:$0xff] %vm290_vm2, %v315_v14 }
 0x114 PF: > { %s16_s21 = sadd.s32 1, %s398_s21  }
 0x115   : > { %p13_p4 = scmp.ge.s32.totalorder %s16_s21, 4  }
 0x117   :  { %15 = sbr.rel (!%p13_p4) target bundleno = 1 (0x1), region = 74 }

// kernel: transformer_policy_forward.7
= control target key start
LH: loop header
LB: loop body
LE: loop exit
PB: predicated region body
PF: predicated region fallthrough
CT: control target
= control target key end

     0   :  { %s329_s12 = smov 0   ;;  %s371_s0 = inlined_call_operand.vmem [shape: f32[2,8,32], index: 0, kind: input, shape index: {}]   ;;  %s372_s1 = inlined_call_operand.vmem [shape: f32[32,6], index: 1, kind: input, shape index: {}]   ;;  %s373_s2 = inlined_call_operand.vmem [shape: f32[1,6], index: 2, kind: input, shape index: {}]   ;;  %s374_s3 = inlined_call_operand.vmem [shape: f32[2,8,6], index: 3, kind: output, shape index: {}]  }
   0x1 LB: > { %s278_s13 = sadd.s32 4294967295, %s307_s12   ;;  %p282_p0 = scmp.ge.s32.totalorder %s307_s12, 1  ;;  %s307_s12 = sphi %s329_s12, %s13_s12  }
   0x2   : > { %p136_p1 = scmp.lt.s32.totalorder %s307_s12, 3 }
   0x4   : > { %p137_p2 = pnand %p282_p0, %p136_p1 }
   0x5   : > { %p158_p3 = scmp.lt.s32.totalorder (!%p137_p2), %s278_s13, 1 }
   0x6   : > { %140 = sbr.rel (%p137_p2) target bundleno = 412 (0x19c), region = 32 }
   0xb   : > { %v170_v0 = vld [vmem:[%s372_s1 + $0x18] sm:$0xff]  ;;  %v169_v1 = vld [vmem:[%s372_s1 + $0x10] sm:$0xff]  ;;  %v168_v2 = vld [vmem:[%s372_s1 + $0x8] sm:$0xff]  ;;  %s376_s13 = smov (!%p158_p3, %s278_s13), 1  ;;  %vm175_vm0 = vcmask 261120   ;;  %vm199_vm1 = vcmask 48128  }
   0xc   : > { %191 = vmatpush.msra.mxu0 %v170_v0  ;;  %v167_v3 = vld [vmem:[%s372_s1] sm:$0xff]  ;;  %s283_s22 = sshll.u32 %s376_s13, 3 }
   0xd   : > { %s161_s25 = scalar_lea.vmem %s371_s0, %s283_s22  ;;  %v296_v5 = vld [vmem:[%s373_s2] ss:$0 sm:$0xff]  ;;  %s165_s30 = scalar_lea.vmem %s374_s3, %s283_s22 }
   0xe   : > { %192 = vmatpush.msra.mxu0 %v169_v1  ;;  %v166_v4 = vld [vmem:[%s161_s25] sm:$0xff] }
  0x10   : > { %193 = vmatpush.msra.mxu0 %v168_v2 }
  0x12   : > { %194 = vmatpush.msra.mxu0 %v167_v3 }
  0x13   : > { %285 = vmatmul.msk.f32.vlgmr.msra.gmra.mxu0 %vm175_vm0, %v166_v4 }
  0x90   : > { %v196_v6 = vpop.f32.mrf.mxu0 }
  0x91   : > { %v197_v7 = vadd.f32 %v296_v5, %v196_v6 }
  0x93   : > { %v200_v8 = vsel %vm199_vm1, %v197_v7, -inf }
  0x94   : > { %201 = vmax.xlane.f32.xlu0 %v200_v8 }
 0x107   : > { %v202_v9 = vpop.xlane.xlu0 %201 }
 0x108   : > { %v203_v10 = vsub.f32 %v197_v7, %v202_v9 }
 0x10a   : > { %v204_v11 = vmul.f32 1.442695, %v203_v10 }
 0x10c   : > { %297 = vpow2.f32 %v204_v11 }
 0x112   : > { %v298_v12 = vpop.eup %297 }
 0x113   : > { %v206_v13 = vsel %vm199_vm1, %v298_v12, 0.0 }
 0x114   : > { %207 = vadd.xlane.f32.xlu0 %v206_v13 }
 0x187   : > { %v208_v14 = vpop.xlane.xlu0 %207 }
 0x188   : > { %299 = vrcp.f32 %v208_v14  ;;  %v220_v18 = vand.u32 2147483648, %v208_v14  ;;  %v218_v20 = vand.u32 2147483647, %v208_v14  ;;  %vm214_vm3 = vweird.f32 %v208_v14 }
 0x18a   : > { %v221_v22 = vor.u32 1.1754944e-38, %v220_v18  ;;  %vm219_vm5 = vcmp.eq.f32.partialorder %v218_v20, 8.507059e+37 }
 0x18e   : > { %v300_v15 = vpop.eup %299 }
 0x18f   : > { %v210_v16 = vmul.f32 %v300_v15, %v208_v14  ;;  %vm215_vm2 = vweird.f32 %v300_v15 }
 0x190   : > { %vm216_vm4 = vmor %vm214_vm3, %vm215_vm2 }
 0x191   : > { %v211_v17 = vsub.f32 1.0, %v210_v16 }
 0x193   : > { %v212_v19 = vmul.f32 %v300_v15, %v211_v17 }
 0x195   : > { %v213_v21 = vadd.f32 %v300_v15, %v212_v19 }
 0x197   : > { %v217_v23 = vsel %vm216_vm4, %v300_v15, %v213_v21 }
 0x198   : > { %v222_v24 = vsel %vm219_vm5, %v221_v22, %v217_v23 }
 0x199   : > { %v223_v25 = vmul.f32 %v298_v12, %v222_v24 }
 0x19b   : > { %224 = vst.msk [vmem:[%s165_s30] sm:$0xff] %vm199_vm1, %v223_v25 }
 0x19c PF: > { %s13_s12 = sadd.s32 1, %s307_s12  }
 0x19d   : > { %p10_p4 = scmp.ge.s32.totalorder %s13_s12, 4  }
 0x19f   :  { %12 = sbr.rel (!%p10_p4) target bundleno = 1 (0x1), region = 62 }

// kernel: transformer_policy_forward.5
= control target key start
LH: loop header
LB: loop body
LE: loop exit
PB: predicated region body
PF: predicated region fallthrough
CT: control target
= control target key end

     0   :  { %s1147_s25 = smov 0   ;;  %s1311_s0 = inlined_call_operand.vmem [shape: f32[2,8,32], index: 0, kind: input, shape index: {}]   ;;  %s1312_s1 = inlined_call_operand.vmem [shape: f32[32,96], index: 1, kind: input, shape index: {}]   ;;  %s1313_s2 = inlined_call_operand.vmem [shape: f32[1,96], index: 2, kind: input, shape index: {}]   ;;  %s1314_s3 = inlined_call_operand.vmem [shape: f32[32,32], index: 3, kind: input, shape index: {}]   ;;  %s1315_s4 = inlined_call_operand.vmem [shape: f32[1,32], index: 4, kind: input, shape index: {}]   ;;  %s1316_s5 = inlined_call_operand.vmem [shape: f32[1,32], index: 5, kind: input, shape index: {}]   ;;  %s1317_s6 = inlined_call_operand.vmem [shape: f32[1,32], index: 6, kind: input, shape index: {}]   ;;  %s1318_s7 = inlined_call_operand.vmem [shape: f32[32,64], index: 7, kind: input, shape index: {}]   ;;  %s1319_s8 = inlined_call_operand.vmem [shape: f32[1,64], index: 8, kind: input, shape index: {}]   ;;  %s1320_s9 = inlined_call_operand.vmem [shape: f32[64,32], index: 9, kind: input, shape index: {}]   ;;  %s1321_s10 = inlined_call_operand.vmem [shape: f32[1,32], index: 10, kind: input, shape index: {}]   ;;  %s1322_s11 = inlined_call_operand.vmem [shape: f32[1,32], index: 11, kind: input, shape index: {}]   ;;  %s1323_s12 = inlined_call_operand.vmem [shape: f32[1,32], index: 12, kind: input, shape index: {}]   ;;  %s1324_s13 = inlined_call_operand.vmem [shape: f32[2,8,32], index: 13, kind: output, shape index: {}]  }
   0x1 LB: > { %s976_s26 = sadd.s32 4294967295, %s1060_s25   ;;  %p980_p0 = scmp.ge.s32.totalorder %s1060_s25, 1  ;;  %s1060_s25 = sphi %s1147_s25, %s23_s25  }
   0x2   : > { %p386_p1 = scmp.lt.s32.totalorder %s1060_s25, 3 }
   0x4   : > { %p387_p2 = pnand %p980_p0, %p386_p1 }
   0x5   : > { %p428_p3 = scmp.lt.s32.totalorder (!%p387_p2), %s976_s26, 1  ;;  %s1062_s24 = smov (!%p387_p2), 64  }
   0x6   : > { %390 = sbr.rel (%p387_p2) target bundleno = 2239 (0x8bf), region = 72  ;;  %s1063_s27 = smov (!%p387_p2), 120  }
   0x7   : > { %s1064_s28 = smov (!%p387_p2), 96   ;;  %s1065_s29 = smov (!%p387_p2), 56  }
   0x8   : > { %s1066_s30 = smov (!%p387_p2), 88   ;;  %s1067_s14 = smov (!%p387_p2), 104  }
   0x9   : > { %s1068_s15 = smov (!%p387_p2), 72   ;;  %s1069_s16 = smov (!%p387_p2), 80  }
   0xa   : > { %s1070_s17 = smov (!%p387_p2), 112   ;;  %s1071_s19 = smov (!%p387_p2), 40  }
   0xb   : > { %v440_v0 = vld [vmem:[%s1312_s1 + $0x18] sm:$0xff]  ;;  %v439_v1 = vld [vmem:[%s1312_s1 + $0x10] sm:$0xff]  ;;  %v438_v2 = vld [vmem:[%s1312_s1 + $0x8] sm:$0xff]  ;;  %s1326_s26 = smov (!%p428_p3, %s976_s26), 1  ;;  %vm445_vm0 = vcmask 261120   ;;  %vm472_vm1 = vcmask 64512  }
   0xc   : > { %461 = vmatpush.msra.mxu0 %v440_v0  ;;  %v437_v3 = vld [vmem:[%s1312_s1] sm:$0xff]  ;;  %s981_s18 = sshll.u32 %s1326_s26, 3  ;;  %s1072_s20 = smov 8   ;;  %vm746_vm2 = vcmask 130048   ;;  %vm748_vm3 = vcmask 195584   ;;  %vm865_vm8 = vcmask 523264  }
   0xd   : > { %s431_s21 = scalar_lea.vmem %s1311_s0, %s981_s18  ;;  %v1024_v5 = vld [vmem:[%s1313_s2] ss:$0 sm:$0xff]  ;;  %s1074_s22 = smov 24  }
   0xe   : > { %462 = vmatpush.msra.mxu0 %v439_v1  ;;  %v1175_v4 = vld [vmem:[%s431_s21] sm:$0xff]  ;;  %s1073_s21 = smov 48   ;;  %s1075_s23 = smov 16  }
  0x10   : > { %463 = vmatpush.msra.mxu0 %v438_v2 }
  0x12   : > { %464 = vmatpush.msra.mxu0 %v437_v3  ;;  %v753_v3 = vld [vmem:[%s1314_s3 + $0x18] sm:$0xff] }
  0x13   : > { %983 = vmatmul.msk.f32.vlgmr.msra.gmra.mxu0 %vm445_vm0, %v1175_v4 }
  0x90   : > { %v466_v6 = vpop.f32.mrf.mxu0 }
  0x91   : > { %v1182_v7 = vadd.f32 %v1024_v5, %v466_v6  ;;  %v752_v5 = vld [vmem:[%s1314_s3 + $0x10] sm:$0xff]  ;;  %v751_v6 = vld [vmem:[%s1314_s3 + $0x8] sm:$0xff] }
  0x93   : > { %509 = vrot.lane.b32.xlu2 %v1182_v7, %s1062_s24  ;;  %535 = vrot.lane.b32.xlu1 %v1182_v7, %s1063_s27 }
  0x94   : > { %470 = vrot.lane.b32.xlu0 %v1182_v7, %s1064_s28 }
  0x9b   : > { %575 = vrot.lane.b32.xlu2 %v1182_v7, %s1065_s29 }
  0x9c   : > { %537 = vrot.lane.b32.xlu0 %v1182_v7, %s1066_s30 }
  0xed   : > { %v510_v8 = vpop.permute.xlu2 %509 }
  0xee   : > { %530 = vmatpush.msra.mxu2 %v510_v8 }
  0xf5   : > { %v576_v9 = vpop.permute.xlu2 %575 }
  0xf6   : > { %596 = vmatpush.msrb.mxu2 %v576_v9 }
 0x105   : > { %v536_v12 = vpop.permute.xlu1 %535 }
 0x106   : > { %v471_v10 = vpop.permute.xlu0 %470 }
 0x107   : > { %984 = vmatpush.xpose.msk.msra.mxu1 %vm472_vm1, %v471_v10 }
 0x10a   : > { %985 = vmatmul.msk.f32.vlgmr.msra.gmra.mxu1 %vm472_vm1, %v1182_v7 }
 0x10e   : > { %v538_v11 = vpop.permute.xlu0 %537 }
 0x10f   : > { %987 = vmatpush.xpose.msk.msra.mxu3 %vm472_vm1, %v538_v11 }
 0x112   : > { %988 = vmatmul.msk.f32.vlgmr.msra.gmra.mxu3 %vm472_vm1, %v536_v12 }
 0x187   : > { %v494_v13 = vpop.f32.mrf.mxu1 }
 0x188   : > { %v497_v14 = vmul.f32 0.35355338, %v494_v13 }
 0x18a   : > { %v498_v15 = vsel %vm472_vm1, %v497_v14, -inf }
 0x18b   : > { %499 = vmax.xlane.f32.xlu1 %v498_v15 }
 0x195   : > { %v560_v16 = vpop.f32.mrf.mxu3 }
 0x196   : > { %v563_v17 = vmul.f32 0.35355338, %v560_v16 }
 0x198   : > { %v564_v18 = vsel %vm472_vm1, %v563_v17, -inf }
 0x199   : > { %565 = vmax.xlane.f32.xlu2 %v564_v18 }
 0x1a4   : > { %667 = vrot.lane.b32.xlu1 %v1182_v7, %s1067_s14 }
 0x1b1   : > { %669 = vrot.lane.b32.xlu2 %v1182_v7, %s1068_s15  ;;  %s435_s15 = scalar_lea.vmem %s1324_s13, %s981_s18 }
 0x1fe   : > { %v500_v19 = vpop.xlane.xlu1 %499 }
 0x1ff   : > { %v501_v20 = vsub.f32 %v497_v14, %v500_v19  ;;  %v1025_v14 = vld [vmem:[%s1315_s4] ss:$0 sm:$0xff]  ;;  %v1076_v19 = vmov 32.0  }
 0x201   : > { %v502_v21 = vmul.f32 1.442695, %v501_v20 }
 0x203   : > { %1032 = vpow2.f32 %v502_v21 }
 0x209   : > { %v1033_v22 = vpop.eup %1032 }
 0x20a   : > { %v504_v23 = vsel %vm472_vm1, %v1033_v22, 0.0 }
 0x20b   : > { %505 = vadd.xlane.f32.xlu2 %v504_v23 }
 0x20c   : > { %v566_v24 = vpop.xlane.xlu2 %565 }
 0x20d   : > { %v567_v25 = vsub.f32 %v563_v17, %v566_v24 }
 0x20f   : > { %v568_v26 = vmul.f32 1.442695, %v567_v25 }
 0x211   : > { %1034 = vpow2.f32 %v568_v26 }
 0x214   : > { %v670_v29 = vpop.permute.xlu2 %669 }
 0x216   : > { %v668_v37 = vpop.permute.xlu1 %667 }
 0x217   : > { %v1035_v27 = vpop.eup %1034 }
 0x218   : > { %v570_v28 = vsel %vm472_vm1, %v1035_v27, 0.0 }
 0x219   : > { %571 = vadd.xlane.f32.xlu0 %v570_v28 }
 0x223   : > { %603 = vrot.lane.b32.xlu2 %v1182_v7, %s1069_s16 }
 0x22d   : > { %601 = vrot.lane.b32.xlu0 %v1182_v7, %s1070_s17 }
 0x27e   : > { %v506_v30 = vpop.xlane.xlu2 %505 }
 0x27f   : > { %1036 = vrcp.f32 %v506_v30  ;;  %v824_v30 = vld [vmem:[%s1318_s7 + $0x18] sm:$0xff] }
 0x285   : > { %v1037_v31 = vpop.eup %1036 }
 0x286   : > { %v604_v32 = vpop.permute.xlu2 %603  ;;  %v508_v33 = vmul.f32 %v1037_v31, %v1033_v22  ;;  %v823_v31 = vld [vmem:[%s1318_s7 + $0x10] sm:$0xff] }
 0x287   : > { %990 = vmatpush.xpose.msk.msrb.mxu1 %vm472_vm1, %v604_v32  ;;  %v822_v32 = vld [vmem:[%s1318_s7 + $0x8] sm:$0xff] }
 0x288   : > { %986 = vmatmul.msk.f32.vlgmr.msra.gmra.mxu2 %vm472_vm1, %v508_v33  ;;  %v821_v33 = vld [vmem:[%s1318_s7] sm:$0xff] }
 0x289   : > { %993 = vmatpush.xpose.msk.msra.mxu2 %vm472_vm1, %v670_v29 }
 0x28b   : > { %773 = vmatpush.msra.mxu1 %v753_v3 }
 0x28c   : > { %v572_v34 = vpop.xlane.xlu0 %571 }
 0x28d   : > { %1038 = vrcp.f32 %v572_v34  ;;  %774 = vmatpush.msra.mxu1 %v752_v5  ;;  %v860_v34 = vld [vmem:[%s1320_s9 + $0x38] sm:$0xff] }
 0x28e   : > { %877 = vmatpush.msrb.mxu0 %v860_v34 }
 0x28f   : > { %775 = vmatpush.msra.mxu1 %v751_v6 }
 0x293   : > { %v1039_v35 = vpop.eup %1038 }
 0x294   : > { %v574_v36 = vmul.f32 %v1039_v35, %v1035_v27  ;;  %v859_v35 = vld [vmem:[%s1320_s9 + $0x30] sm:$0xff] }
 0x295   : > { %878 = vmatpush.msrb.mxu0 %v859_v35 }
 0x296   : > { %989 = vmatmul.msk.f32.vlgmr.msrb.gmra.mxu2 %vm472_vm1, %v574_v36  ;;  %v858_v36 = vld [vmem:[%s1320_s9 + $0x28] sm:$0xff] }
 0x297   : > { %879 = vmatpush.msrb.mxu0 %v858_v36 }
 0x29e   : > { %994 = vmatmul.msk.f32.vlgmr.msra.gmra.mxu2 %vm472_vm1, %v668_v37 }
 0x29f   : > { %v602_v38 = vpop.permute.xlu0 %601 }
 0x2a0   : > { %991 = vmatmul.msk.f32.vlgmr.msrb.gmra.mxu1 %vm472_vm1, %v602_v38 }
 0x30b   : > { %v1208_v39 = vpop.f32.mrf.mxu2 }
 0x319   : > { %v598_v40 = vpop.f32.mrf.mxu2 }
 0x31d   : > { %v626_v41 = vpop.f32.mrf.mxu1 }
 0x31e   : > { %v629_v42 = vmul.f32 0.35355338, %v626_v41  ;;  %v856_v41 = vld [vmem:[%s1320_s9 + $0x18] sm:$0xff] }
 0x320   : > { %v630_v43 = vsel %vm472_vm1, %v629_v42, -inf }
 0x321   : > { %v692_v44 = vpop.f32.mrf.mxu2  ;;  %631 = vmax.xlane.f32.xlu2 %v630_v43 }
 0x322   : > { %v695_v45 = vmul.f32 0.35355338, %v692_v44 }
 0x324   : > { %v696_v46 = vsel %vm472_vm1, %v695_v45, -inf }
 0x325   : > { %697 = vmax.xlane.f32.xlu1 %v696_v46 }
 0x33e   : > { %707 = vrot.lane.b32.xlu1 %v1182_v7, %s1071_s19 }
 0x394   : > { %v632_v47 = vpop.xlane.xlu2 %631 }
 0x395   : > { %v633_v48 = vsub.f32 %v629_v42, %v632_v47 }
 0x397   : > { %v634_v49 = vmul.f32 1.442695, %v633_v48  ;;  %v1026_v48 = vld [vmem:[%s1316_s5] ss:$0 sm:$0xff] }
 0x398   : > { %v698_v50 = vpop.xlane.xlu1 %697 }
 0x399   : > { %1040 = vpow2.f32 %v634_v49  ;;  %v699_v51 = vsub.f32 %v695_v45, %v698_v50 }
 0x39b   : > { %v700_v52 = vmul.f32 1.442695, %v699_v51  ;;  %v1027_v51 = vld [vmem:[%s1317_s6] ss:$0 sm:$0xff] }
 0x39d   : > { %1042 = vpow2.f32 %v700_v52 }
 0x39f   : > { %v1041_v53 = vpop.eup %1040 }
 0x3a0   : > { %v636_v54 = vsel %vm472_vm1, %v1041_v53, 0.0 }
 0x3a1   : > { %637 = vadd.xlane.f32.xlu0 %v636_v54  ;;  %v855_v54 = vld [vmem:[%s1320_s9 + $0x10] sm:$0xff] }
 0x3a3   : > { %v1043_v55 = vpop.eup %1042 }
 0x3a4   : > { %v702_v56 = vsel %vm472_vm1, %v1043_v55, 0.0 }
 0x3a5   : > { %703 = vadd.xlane.f32.xlu2 %v702_v56  ;;  %v853_v56 = vld [vmem:[%s1320_s9] sm:$0xff] }
 0x3b0   : > { %v708_v57 = vpop.permute.xlu1 %707 }
 0x3b1   : > { %728 = vmatpush.msrb.mxu2 %v708_v57  ;;  %v1028_v57 = vld [vmem:[%s1319_s8] ss:$0 sm:$0xff] }
 0x3b5   : > { %734 = vrot.lane.b32.xlu0 %v598_v40, %s1072_s20 }
 0x3bd   : > { %641 = vrot.lane.b32.xlu2 %v1182_v7, %s1073_s21  ;;  %v750_v7 = vld [vmem:[%s1314_s3] sm:$0xff] }
 0x3be   : > { %776 = vmatpush.msra.mxu1 %v750_v7 }
 0x414   : > { %v638_v58 = vpop.xlane.xlu0 %637 }
 0x415   : > { %1044 = vrcp.f32 %v638_v58 }
 0x418   : > { %v704_v59 = vpop.xlane.xlu2 %703 }
 0x419   : > { %1046 = vrcp.f32 %v704_v59 }
 0x41a   : > { %1048 = vrcp.f32 %v1076_v19  ;;  %v1031_v19 = vld [vmem:[%s1323_s12] ss:$0 sm:$0xff] }
 0x41b   : > { %v1045_v60 = vpop.eup %1044 }
 0x41c   : > { %v640_v0 = vmul.f32 %v1045_v60, %v1041_v53 }
 0x41f   : > { %v1047_v61 = vpop.eup %1046 }
 0x420   : > { %v706_v62 = vmul.f32 %v1047_v61, %v1043_v55  ;;  %v642_v63 = vpop.permute.xlu2 %641  ;;  %v1049_v20 = vpop.eup %1048  ;;  %v854_v55 = vld [vmem:[%s1320_s9 + $0x8] sm:$0xff]  ;;  %v1029_v61 = vld [vmem:[%s1321_s10] ss:$0 sm:$0xff] }
 0x421   : > { %662 = vmatpush.msrb.mxu3 %v642_v63  ;;  %v786_v21 = vmul.f32 32.0, %v1049_v20  ;;  %vm790_vm4 = vweird.f32 %v1049_v20 }
 0x422   : > { %992 = vmatmul.msk.f32.vlgmr.msrb.gmra.mxu3 %vm472_vm1, %v640_v0  ;;  %995 = vmatmul.msk.f32.vlgmr.msrb.gmra.mxu2 %vm472_vm1, %v706_v62 }
 0x423   : > { %v787_v22 = vsub.f32 1.0, %v786_v21  ;;  %844 = vmatpush.msra.mxu3 %v824_v30 }
 0x425   : > { %v788_v23 = vmul.f32 %v1049_v20, %v787_v22  ;;  %845 = vmatpush.msra.mxu3 %v823_v31 }
 0x427   : > { %v735_v8 = vpop.permute.xlu0 %734  ;;  %v789_v24 = vadd.f32 %v1049_v20, %v788_v23  ;;  %846 = vmatpush.msra.mxu3 %v822_v32 }
 0x428   : > { %v745_v10 = vsel %vm472_vm1, %v1208_v39, %v735_v8  ;;  %v857_v39 = vld [vmem:[%s1320_s9 + $0x20] sm:$0xff] }
 0x429   : > { %v1238_v25 = vsel %vm790_vm4, %v1049_v20, %v789_v24  ;;  %847 = vmatpush.msra.mxu3 %v821_v33  ;;  %880 = vmatpush.msrb.mxu0 %v857_v39 }
 0x42b   : > { %881 = vmatpush.msrb.mxu0 %v856_v41 }
 0x42d   : > { %882 = vmatpush.msrb.mxu0 %v855_v54 }
 0x42f   : > { %883 = vmatpush.msrb.mxu0 %v854_v55 }
 0x431   : > { %884 = vmatpush.msrb.mxu0 %v853_v56 }
 0x4a5   : > { %v664_v1 = vpop.f32.mrf.mxu3  ;;  %v730_v2 = vpop.f32.mrf.mxu2 }
 0x4a6   : > { %742 = vrot.lane.b32.xlu0 %v730_v2, %s1074_s22  ;;  %738 = vrot.lane.b32.xlu2 %v664_v1, %s1075_s23 }
 0x500   : > { %v739_v9 = vpop.permute.xlu2 %738 }
 0x501   : > { %v747_v11 = vsel %vm746_vm2, %v745_v10, %v739_v9 }
 0x518   : > { %v743_v12 = vpop.permute.xlu0 %742 }
 0x519   : > { %v749_v13 = vsel %vm748_vm3, %v747_v11, %v743_v12 }
 0x51a   : > { %996 = vmatmul.msk.f32.vlgmr.msra.gmra.mxu1 %vm445_vm0, %v749_v13 }
 0x597   : > { %v778_v15 = vpop.f32.mrf.mxu1 }
 0x598   : > { %v779_v16 = vadd.f32 %v1025_v14, %v778_v15 }
 0x59a   : > { %v781_v17 = vadd.f32 %v779_v16, %v1175_v4 }
 0x59c   : > { %v782_v18 = vsel %vm445_vm0, %v781_v17, 0.0 }
 0x59d   : > { %783 = vadd.xlane.f32.xlu1 %v782_v18 }
 0x610   : > { %v784_v26 = vpop.xlane.xlu1 %783 }
 0x611   : > { %v792_v27 = vmul.f32 %v1238_v25, %v784_v26 }
 0x613   : > { %v793_v28 = vsub.f32 %v781_v17, %v792_v27  ;;  %v1030_v17 = vld [vmem:[%s1322_s11] ss:$0 sm:$0xff] }
 0x615   : > { %v794_v29 = vmul.f32 %v793_v28, %v793_v28 }
 0x617   : > { %v795_v4 = vsel %vm445_vm0, %v794_v29, 0.0 }
 0x618   : > { %796 = vadd.xlane.f32.xlu2 %v795_v4 }
 0x68b   : > { %v797_v37 = vpop.xlane.xlu2 %796 }
 0x68c   : > { %v798_v38 = vmul.f32 %v797_v37, %v1238_v25 }
 0x68e   : > { %v799_v40 = vadd.f32 1e-05, %v798_v38 }
 0x690   : > { %1050 = vrsqrt.f32 %v799_v40  ;;  %vm806_vm6 = vweird.f32 %v799_v40 }
 0x696   : > { %v1051_v42 = vpop.eup %1050 }
 0x697   : > { %v801_v43 = vmul.f32 %v1051_v42, %v799_v40  ;;  %vm807_vm5 = vweird.f32 %v1051_v42 }
 0x698   : > { %vm808_vm7 = vmor %vm806_vm6, %vm807_vm5 }
 0x699   : > { %v802_v44 = vmul.f32 %v1051_v42, %v801_v43 }
 0x69b   : > { %v803_v45 = vmul.f32 0.5, %v802_v44 }
 0x69d   : > { %v804_v46 = vsub.f32 1.5, %v803_v45 }
 0x69f   : > { %v805_v47 = vmul.f32 %v1051_v42, %v804_v46 }
 0x6a1   : > { %v809_v49 = vsel %vm808_vm7, %v1051_v42, %v805_v47 }
 0x6a2   : > { %v810_v50 = vmul.f32 %v809_v49, %v793_v28 }
 0x6a4   : > { %v815_v52 = vmul.f32 %v1026_v48, %v810_v50 }
 0x6a6   : > { %v820_v53 = vadd.f32 %v1027_v51, %v815_v52 }
 0x6a8   : > { %997 = vmatmul.msk.f32.vlgmr.msra.gmra.mxu3 %vm445_vm0, %v820_v53 }
 0x72b   : > { %v849_v58 = vpop.f32.mrf.mxu3 }
 0x72c   : > { %v850_v59 = vadd.f32 %v1028_v57, %v849_v58 }
 0x72e   : > { %v852_v60 = vmax.f32 %v850_v59, 0.0 }
 0x730   : > { %998 = vmatmul.msk.f32.vlgmr.msrb.gmra.mxu0 %vm865_vm8, %v852_v60 }
 0x7ad   : > { %v886_v62 = vpop.f32.mrf.mxu0 }
 0x7ae   : > { %v887_v63 = vadd.f32 %v1029_v61, %v886_v62 }
 0x7b0   : > { %v889_v0 = vadd.f32 %v887_v63, %v820_v53 }
 0x7b2   : > { %v890_v1 = vsel %vm445_vm0, %v889_v0, 0.0 }
 0x7b3   : > { %891 = vadd.xlane.f32.xlu0 %v890_v1 }
 0x826   : > { %v892_v2 = vpop.xlane.xlu0 %891 }
 0x827   : > { %v893_v3 = vmul.f32 %v892_v2, %v1238_v25 }
 0x829   : > { %v894_v5 = vsub.f32 %v889_v0, %v893_v3 }
 0x82b   : > { %v895_v6 = vmul.f32 %v894_v5, %v894_v5 }
 0x82d   : > { %v896_v7 = vsel %vm445_vm0, %v895_v6, 0.0 }
 0x82e   : > { %897 = vadd.xlane.f32.xlu1 %v896_v7 }
 0x8a1   : > { %v898_v8 = vpop.xlane.xlu1 %897 }
 0x8a2   : > { %v899_v9 = vmul.f32 %v898_v8, %v1238_v25 }
 0x8a4   : > { %v900_v10 = vadd.f32 1e-05, %v899_v9 }
 0x8a6   : > { %1052 = vrsqrt.f32 %v900_v10  ;;  %vm907_vm10 = vweird.f32 %v900_v10 }
 0x8ac   : > { %v1053_v11 = vpop.eup %1052 }
 0x8ad   : > { %v902_v12 = vmul.f32 %v1053_v11, %v900_v10  ;;  %vm908_vm9 = vweird.f32 %v1053_v11 }
 0x8ae   : > { %vm909_vm11 = vmor %vm907_vm10, %vm908_vm9 }
 0x8af   : > { %v903_v13 = vmul.f32 %v1053_v11, %v902_v12 }
 0x8b1   : > { %v904_v14 = vmul.f32 0.5, %v903_v13 }
 0x8b3   : > { %v905_v15 = vsub.f32 1.5, %v904_v14 }
 0x8b5   : > { %v906_v16 = vmul.f32 %v1053_v11, %v905_v15 }
 0x8b7   : > { %v910_v18 = vsel %vm909_vm11, %v1053_v11, %v906_v16 }
 0x8b8   : > { %v911_v20 = vmul.f32 %v910_v18, %v894_v5 }
 0x8ba   : > { %v916_v21 = vmul.f32 %v1030_v17, %v911_v20 }
 0x8bc   : > { %v921_v22 = vadd.f32 %v1031_v19, %v916_v21 }
 0x8be   : > { %922 = vst.msk [vmem:[%s435_s15] sm:$0xff] %vm445_vm0, %v921_v22 }
 0x8bf PF: > { %s23_s25 = sadd.s32 1, %s1060_s25  }
 0x8c0   : > { %p20_p4 = scmp.ge.s32.totalorder %s23_s25, 4  }
 0x8c2   :  { %22 = sbr.rel (!%p20_p4) target bundleno = 1 (0x1), region = 102 }

</bundles_post_ra>
